<compile_context>
chip_gen: v7x
topology: tpu7x:2x2x1
jax: 0.10.0
libtpu: 0.0.40
codegen_flags: <defaults>
</compile_context>

<pallas_src>
import functools
import math

import jax
import jax.numpy as jnp
from jax.experimental import pallas as pl
from jax.experimental.pallas import tpu as pltpu


def _round_up(x, m):
    return (x + m - 1) // m * m


# ---------------------------------------------------------------------------
# In-kernel math helpers
# ---------------------------------------------------------------------------

_SQRT_HALF = 1.0 / math.sqrt(2.0)


def _erf_poly(x):
    """Abramowitz & Stegun 7.1.26 polynomial erf (|error| <= 1.5e-7).

    Built only from exp / mul / add / select so it lowers on every TPU
    generation (avoids depending on a lax.erf lowering rule)."""
    a1, a2, a3, a4, a5 = (0.254829592, -0.284496736, 1.421413741,
                          -1.453152027, 1.061405429)
    p = 0.3275911
    sgn = jnp.where(x >= 0.0, 1.0, -1.0)
    z = jnp.abs(x)
    t = 1.0 / (1.0 + p * z)
    poly = ((((a5 * t + a4) * t + a3) * t + a2) * t + a1) * t
    return sgn * (1.0 - poly * jnp.exp(-z * z))


def _gelu_exact(x):
    # matches torch.nn.functional.gelu (erf form) to ~1e-7
    return 0.5 * x * (1.0 + _erf_poly(x * _SQRT_HALF))


# ---------------------------------------------------------------------------
# Kernels
# ---------------------------------------------------------------------------

def _dense_kernel(x_ref, w_ref, b_ref, o_ref, *, act):
    """out = act(x @ W + b); f32 MXU accumulation."""
    h = jnp.dot(x_ref[...], w_ref[...], preferred_element_type=jnp.float32)
    h = h + b_ref[...].astype(jnp.float32)
    if act == "gelu":
        h = _gelu_exact(h)
    o_ref[...] = h.astype(o_ref.dtype)


def _dense_residual_ln_kernel(x_ref, res_ref, w_ref, b_ref, g_ref, beta_ref,
                              o_ref, *, eps, h_true):
    """out = LayerNorm((x @ W + b) + residual); statistics masked to true hidden width."""
    h = jnp.dot(x_ref[...], w_ref[...], preferred_element_type=jnp.float32)
    h = h + b_ref[...].astype(jnp.float32)
    # TODO(synk): hidden_dropout_prob dropout is identity in inference mode; add a
    # pltpu.prng_random_bits mask here if training-mode parity is ever needed.
    y = h + res_ref[...].astype(jnp.float32)

    hp = y.shape[-1]
    lane = jax.lax.broadcasted_iota(jnp.int32, (1, hp), 1)
    mask = (lane < h_true).astype(jnp.float32)            # zero out padded lanes
    inv_n = 1.0 / float(h_true)

    y = y * mask
    mean = jnp.sum(y, axis=-1, keepdims=True) * inv_n
    cent = (y - mean) * mask
    var = jnp.sum(cent * cent, axis=-1, keepdims=True) * inv_n
    norm = cent * jax.lax.rsqrt(var + eps)
    out = norm * g_ref[...].astype(jnp.float32) + beta_ref[...].astype(jnp.float32)
    o_ref[...] = out.astype(o_ref.dtype)


def _attention_kernel(q_ref, k_ref, v_ref, m_ref, o_ref, *, scale):
    """One (batch, head): softmax(q k^T * scale + mask) v."""
    q = q_ref[...].astype(jnp.float32)            # (S, D)
    k = k_ref[...].astype(jnp.float32)            # (S, D)
    v = v_ref[...].astype(jnp.float32)            # (S, D)
    s = jax.lax.dot_general(q, k, (((1,), (1,)), ((), ())),
                            preferred_element_type=jnp.float32) * scale   # (S, S)
    s = s + m_ref[...].astype(jnp.float32)
    s = s - jnp.max(s, axis=-1, keepdims=True)
    p = jnp.exp(s)
    p = p / jnp.sum(p, axis=-1, keepdims=True)
    # TODO(synk): attention_probs_dropout_prob dropout is identity in inference mode.
    ctx = jnp.dot(p, v, preferred_element_type=jnp.float32)
    o_ref[...] = ctx.astype(o_ref.dtype)


# ---------------------------------------------------------------------------
# pallas_call wrappers
# ---------------------------------------------------------------------------

def _vmem_limit(block_bytes):
    # inputs/outputs are double-buffered by the pipeline; add headroom for internal scratch
    need = 2 * block_bytes + (8 << 20)
    return int(min(max(need, 32 << 20), 112 << 20))


def _dense(x, w, b, *, act=None, tm):
    mp, kp = x.shape
    np_ = w.shape[1]
    db = x.dtype.itemsize
    block_bytes = (tm * kp + kp * np_ + np_ + tm * np_) * db
    cost = pl.CostEstimate(
        flops=2 * mp * kp * np_,
        transcendentals=(mp * np_) if act == "gelu" else 0,
        bytes_accessed=(mp * kp + kp * np_ + np_ + mp * np_) * db,
    )
    return pl.pallas_call(
        functools.partial(_dense_kernel, act=act),
        out_shape=jax.ShapeDtypeStruct((mp, np_), x.dtype),
        grid_spec=pltpu.PrefetchScalarGridSpec(
            num_scalar_prefetch=0,
            grid=(mp // tm,),
            in_specs=[
                pl.BlockSpec((tm, kp), lambda i: (i, 0)),    # activations: streamed row tiles
                pl.BlockSpec((kp, np_), lambda i: (0, 0)),   # weight: resident
                pl.BlockSpec((1, np_), lambda i: (0, 0)),    # bias: resident
            ],
            out_specs=pl.BlockSpec((tm, np_), lambda i: (i, 0)),
        ),
        compiler_params=pltpu.CompilerParams(
            dimension_semantics=("parallel",),
            vmem_limit_bytes=_vmem_limit(block_bytes),
        ),
        cost_estimate=cost,
    )(x, w, b.reshape(1, np_))


def _dense_residual_ln(x, res, w, b, g, beta, *, eps, h_true, tm):
    mp, kp = x.shape
    np_ = w.shape[1]
    db = x.dtype.itemsize
    block_bytes = (tm * kp + tm * np_ + kp * np_ + 3 * np_ + tm * np_) * db
    cost = pl.CostEstimate(
        flops=2 * mp * kp * np_ + 10 * mp * np_,
        transcendentals=mp,                                   # rsqrt per row
        bytes_accessed=(mp * kp + mp * np_ + kp * np_ + 3 * np_ + mp * np_) * db,
    )
    return pl.pallas_call(
        functools.partial(_dense_residual_ln_kernel, eps=eps, h_true=h_true),
        out_shape=jax.ShapeDtypeStruct((mp, np_), x.dtype),
        grid_spec=pltpu.PrefetchScalarGridSpec(
            num_scalar_prefetch=0,
            grid=(mp // tm,),
            in_specs=[
                pl.BlockSpec((tm, kp), lambda i: (i, 0)),    # dense input (streamed)
                pl.BlockSpec((tm, np_), lambda i: (i, 0)),   # residual (streamed)
                pl.BlockSpec((kp, np_), lambda i: (0, 0)),   # weight (resident)
                pl.BlockSpec((1, np_), lambda i: (0, 0)),    # bias
                pl.BlockSpec((1, np_), lambda i: (0, 0)),    # LN gamma
                pl.BlockSpec((1, np_), lambda i: (0, 0)),    # LN beta
            ],
            out_specs=pl.BlockSpec((tm, np_), lambda i: (i, 0)),
        ),
        compiler_params=pltpu.CompilerParams(
            dimension_semantics=("parallel",),
            vmem_limit_bytes=_vmem_limit(block_bytes),
        ),
        cost_estimate=cost,
    )(x, res, w, b.reshape(1, np_), g.reshape(1, np_), beta.reshape(1, np_))


def _attention(q, k, v, mask4, *, scale):
    b, nh, s, d = q.shape
    db = q.dtype.itemsize
    cost = pl.CostEstimate(
        flops=4 * b * nh * s * s * d,
        transcendentals=b * nh * s * s,
        bytes_accessed=(4 * b * nh * s * d + b * s * s) * db,
    )
    return pl.pallas_call(
        functools.partial(_attention_kernel, scale=scale),
        out_shape=jax.ShapeDtypeStruct((b, nh, s, d), q.dtype),
        grid_spec=pltpu.PrefetchScalarGridSpec(
            num_scalar_prefetch=0,
            grid=(b, nh),
            in_specs=[
                pl.BlockSpec((None, None, s, d), lambda bi, hi: (bi, hi, 0, 0)),
                pl.BlockSpec((None, None, s, d), lambda bi, hi: (bi, hi, 0, 0)),
                pl.BlockSpec((None, None, s, d), lambda bi, hi: (bi, hi, 0, 0)),
                pl.BlockSpec((None, None, s, s), lambda bi, hi: (bi, 0, 0, 0)),  # mask shared per batch
            ],
            out_specs=pl.BlockSpec((None, None, s, d), lambda bi, hi: (bi, hi, 0, 0)),
        ),
        compiler_params=pltpu.CompilerParams(
            dimension_semantics=("parallel", "parallel"),
        ),
        cost_estimate=cost,
    )(q, k, v, mask4)


# ---------------------------------------------------------------------------
# Parameter padding (lane-dense widths, fused QKV)
# ---------------------------------------------------------------------------

def _pad2(w, rows, cols):
    return jnp.zeros((rows, cols), w.dtype).at[: w.shape[0], : w.shape[1]].set(w)


def _pad1(v, n):
    return jnp.zeros((n,), v.dtype).at[: v.shape[0]].set(v)


def pad_layer_params(p, hp, ip):
    """Zero-pad one layer's params to multiples of 128 and fuse Q/K/V into one matmul."""
    return dict(
        wqkv=jnp.concatenate([_pad2(p["wq"], hp, hp), _pad2(p["wk"], hp, hp),
                              _pad2(p["wv"], hp, hp)], axis=1),
        bqkv=jnp.concatenate([_pad1(p["bq"], hp), _pad1(p["bk"], hp), _pad1(p["bv"], hp)]),
        wo=_pad2(p["wo"], hp, hp), bo=_pad1(p["bo"], hp),
        g1=_pad1(p["g1"], hp), be1=_pad1(p["be1"], hp),
        wi=_pad2(p["wi"], hp, ip), bi=_pad1(p["bi"], ip),
        wo2=_pad2(p["wo2"], ip, hp), bo2=_pad1(p["bo2"], hp),
        g2=_pad1(p["g2"], hp), be2=_pad1(p["be2"], hp),
    )


# ---------------------------------------------------------------------------
# GTEncoder forward (default flags: returns final hidden states only)
# ---------------------------------------------------------------------------

def gt_encoder(hidden_states, attention_mask, layer_params, *, num_heads, eps=1e-12):
    """hidden_states: [B, S, H]; attention_mask: additive mask broadcastable to [B,1,S,S] or None;
    layer_params: per-layer dicts with weights in x @ W orientation (PyTorch Linear.weight.T)."""
    b, s, h = hidden_states.shape
    assert h % num_heads == 0
    d = h // num_heads
    m = b * s

    hp = _round_up(max(h, 128), 128)
    # Row tile: large multiple-of-256 tiles for real workloads, full (8-aligned) extent for tiny ones.
    tm = 512 if m >= 512 else _round_up(m, 8)
    mp = _round_up(m, tm)

    dtype = hidden_states.dtype
    h_pad = jnp.zeros((mp, hp), dtype).at[:m, :h].set(hidden_states.reshape(m, h))

    if attention_mask is None:
        mask4 = jnp.zeros((b, 1, s, s), jnp.float32)
    else:
        mask4 = jnp.broadcast_to(attention_mask.astype(jnp.float32), (b, 1, s, s))

    scale = 1.0 / math.sqrt(d)

    def to_heads(t):
        return t.reshape(b, s, num_heads, d).transpose(0, 2, 1, 3)   # [B, nh, S, d]

    padded = [pad_layer_params(p, hp, _round_up(max(p["wi"].shape[1], 128), 128))
              for p in layer_params]

    for pp in padded:
        # --- GTSelfAttention ---------------------------------------------------
        qkv = _dense(h_pad, pp["wqkv"], pp["bqkv"], tm=tm)            # [Mp, 3*Hp]
        q = to_heads(qkv[:m, 0 * hp: 0 * hp + h])
        k = to_heads(qkv[:m, 1 * hp: 1 * hp + h])
        v = to_heads(qkv[:m, 2 * hp: 2 * hp + h])
        ctx = _attention(q, k, v, mask4, scale=scale)                 # [B, nh, S, d]
        ctx = ctx.transpose(0, 2, 1, 3).reshape(m, h)
        ctx_pad = jnp.zeros((mp, hp), dtype).at[:m, :h].set(ctx)

        # --- GTSelfOutput: dense + dropout(id) + residual + LayerNorm ----------
        attn_out = _dense_residual_ln(ctx_pad, h_pad, pp["wo"], pp["bo"],
                                      pp["g1"], pp["be1"], eps=eps, h_true=h, tm=tm)

        # --- GTIntermediate: dense + exact GELU --------------------------------
        inter = _dense(attn_out, pp["wi"], pp["bi"], act="gelu", tm=tm)

        # --- GTOutput: dense + dropout(id) + residual + LayerNorm --------------
        h_pad = _dense_residual_ln(inter, attn_out, pp["wo2"], pp["bo2"],
                                   pp["g2"], pp["be2"], eps=eps, h_true=h, tm=tm)

    return h_pad[:m, :h].reshape(b, s, h)


# ---------------------------------------------------------------------------
# Pure-JAX reference (mirrors the PyTorch module)
# ---------------------------------------------------------------------------

def encoder_reference(hidden_states, attention_mask, layer_params, *, num_heads, eps):
    hi = jax.lax.Precision.HIGHEST
    mm = functools.partial(jnp.matmul, precision=hi)

    def ln(x, g, bb):
        mu = jnp.mean(x, axis=-1, keepdims=True)
        var = jnp.mean((x - mu) ** 2, axis=-1, keepdims=True)
        return (x - mu) * jax.lax.rsqrt(var + eps) * g + bb

    hcur = hidden_states.astype(jnp.float32)
    b_, s_, hdim = hcur.shape
    d = hdim // num_heads

    def split(t):
        return t.reshape(b_, s_, num_heads, d).transpose(0, 2, 1, 3)

    for p in layer_params:
        x = hcur
        q = split(mm(x, p["wq"]) + p["bq"])
        k = split(mm(x, p["wk"]) + p["bk"])
        v = split(mm(x, p["wv"]) + p["bv"])
        scores = jnp.einsum("bhqd,bhkd->bhqk", q, k, precision=hi) / math.sqrt(d)
        if attention_mask is not None:
            scores = scores + attention_mask
        probs = jax.nn.softmax(scores, axis=-1)
        ctx = jnp.einsum("bhqk,bhkd->bhqd", probs, v, precision=hi)
        ctx = ctx.transpose(0, 2, 1, 3).reshape(b_, s_, hdim)
        attn_out = ln(mm(ctx, p["wo"]) + p["bo"] + x, p["g1"], p["be1"])
        inter = jax.nn.gelu(mm(attn_out, p["wi"]) + p["bi"], approximate=False)
        hcur = ln(mm(inter, p["wo2"]) + p["bo2"] + attn_out, p["g2"], p["be2"])
    return hcur


# ---------------------------------------------------------------------------
# Demo
# ---------------------------------------------------------------------------

if __name__ == "__main__":
    B, S, H = 2, 8, 32
    NUM_HEADS = 4
    INTERMEDIATE = 64
    NUM_LAYERS = 2
    EPS = 1e-12

    key = jax.random.PRNGKey(0)
    key, k_hs = jax.random.split(key)
    hidden_states = jax.random.normal(k_hs, (B, S, H), dtype=jnp.float32)

    # Additive attention mask (0 = keep, -1e4 = masked); mask the last 2 keys of batch 1.
    attention_mask = jnp.zeros((B, 1, 1, S), jnp.float32).at[1, :, :, S - 2:].set(-10000.0)

    def init_layer(k):
        ks = jax.random.split(k, 16)
        w = lambda kk, fi, fo: jax.random.normal(kk, (fi, fo), jnp.float32) / math.sqrt(fi)
        vec = lambda kk, n, sc: sc * jax.random.normal(kk, (n,), jnp.float32)
        return dict(
            wq=w(ks[0], H, H), bq=vec(ks[1], H, 0.02),
            wk=w(ks[2], H, H), bk=vec(ks[3], H, 0.02),
            wv=w(ks[4], H, H), bv=vec(ks[5], H, 0.02),
            wo=w(ks[6], H, H), bo=vec(ks[7], H, 0.02),
            g1=1.0 + vec(ks[8], H, 0.1), be1=vec(ks[9], H, 0.02),
            wi=w(ks[10], H, INTERMEDIATE), bi=vec(ks[11], INTERMEDIATE, 0.02),
            wo2=w(ks[12], INTERMEDIATE, H), bo2=vec(ks[13], H, 0.02),
            g2=1.0 + vec(ks[14], H, 0.1), be2=vec(ks[15], H, 0.02),
        )

    params = [init_layer(k) for k in jax.random.split(key, NUM_LAYERS)]

    out = gt_encoder(hidden_states, attention_mask, params, num_heads=NUM_HEADS, eps=EPS)
    out = jax.block_until_ready(out)

    ref = encoder_reference(hidden_states, attention_mask, params, num_heads=NUM_HEADS, eps=EPS)
    assert out.shape == (B, S, H)
    max_err = float(jnp.max(jnp.abs(out - ref)))
    assert jnp.allclose(out, ref, atol=1e-3, rtol=1e-3), f"mismatch vs reference: max|err|={max_err}"

    print("KERNEL_OK")
</pallas_src>

<mosaic_0001>
module attributes {stable_mosaic.version = 11 : i64} {
  func.func @_dense_kernel(%arg0: i32, %arg1: memref<16x128xf32, #tpu.memory_space<vmem>>, %arg2: memref<128x384xf32, #tpu.memory_space<vmem>>, %arg3: memref<1x384xf32, #tpu.memory_space<vmem>>, %arg4: memref<16x384xf32, #tpu.memory_space<vmem>>) attributes {dimension_semantics = [#tpu.dimension_semantics<parallel>], iteration_bounds = array<i64: 1>, scalar_prefetch = 0 : i64, scratch_operands = 0 : i64, tpu.core_type = #tpu.core_type<tc>, window_params = [{transform_indices = @transform_0, window_bounds = array<i64: 16, 128>}, {pipeline_mode = #tpu.pipeline_mode<synchronous>, transform_indices = @transform_1, window_bounds = array<i64: 128, 384>}, {pipeline_mode = #tpu.pipeline_mode<synchronous>, transform_indices = @transform_2, window_bounds = array<i64: 1, 384>}, {transform_indices = @transform_3, window_bounds = array<i64: 16, 384>}]} {
    %c0 = arith.constant 0 : index
    %c0_0 = arith.constant 0 : index
    %0 = vector.load %arg1[%c0, %c0_0] : memref<16x128xf32, #tpu.memory_space<vmem>>, vector<16x128xf32>
    %c0_1 = arith.constant 0 : index
    %c0_2 = arith.constant 0 : index
    %1 = vector.load %arg2[%c0_1, %c0_2] : memref<128x384xf32, #tpu.memory_space<vmem>>, vector<128x384xf32>
    %cst = arith.constant dense<0.000000e+00> : vector<16x384xf32>
    %2 = tpu.matmul %0, %1, %cst {dimension_numbers = #tpu.dot_dimension_numbers<[1], [0], [0], [1], [0, 0, 1, 1], [], []>} : vector<16x128xf32>, vector<128x384xf32>, vector<16x384xf32> -> vector<16x384xf32>
    %c0_3 = arith.constant 0 : index
    %c0_4 = arith.constant 0 : index
    %3 = vector.load %arg3[%c0_3, %c0_4] : memref<1x384xf32, #tpu.memory_space<vmem>>, vector<1x384xf32>
    %4 = vector.broadcast %3 : vector<1x384xf32> to vector<16x384xf32>
    %5 = arith.addf %2, %4 : vector<16x384xf32>
    %c0_5 = arith.constant 0 : index
    %c0_6 = arith.constant 0 : index
    %6 = vector.load %arg4[%c0_5, %c0_6] : memref<16x384xf32, #tpu.memory_space<vmem>>, vector<16x384xf32>
    tpu.vector_store %arg4[%c0_5, %c0_6], %5 {strides = array<i32>} : memref<16x384xf32, #tpu.memory_space<vmem>>, vector<16x384xf32>,
    return
  }
  func.func @transform_0(%arg0: i32) -> (i32, i32) {
    %c0_i32 = arith.constant 0 : i32
    %c0_i32_0 = arith.constant 0 : i32
    return %arg0, %c0_i32 : i32, i32
  }
  func.func @transform_1(%arg0: i32) -> (i32, i32) {
    %c0_i32 = arith.constant 0 : i32
    %c0_i32_0 = arith.constant 0 : i32
    %c0_i32_1 = arith.constant 0 : i32
    return %c0_i32, %c0_i32_0 : i32, i32
  }
  func.func @transform_2(%arg0: i32) -> (i32, i32) {
    %c0_i32 = arith.constant 0 : i32
    %c0_i32_0 = arith.constant 0 : i32
    %c0_i32_1 = arith.constant 0 : i32
    return %c0_i32, %c0_i32_0 : i32, i32
  }
  func.func @transform_3(%arg0: i32) -> (i32, i32) {
    %c0_i32 = arith.constant 0 : i32
    %c0_i32_0 = arith.constant 0 : i32
    return %arg0, %c0_i32 : i32, i32
  }
}

</mosaic_0001>

<bundles_post_ra>
// kernel: tpu_custom_call.1
= control target key start
LH: loop header
LB: loop body
LE: loop exit
PB: predicated region body
PF: predicated region fallthrough
CT: control target
= control target key end

     0   :  { %8 = vsyncpa [#allocation3], 0  ;;  %s558_s0 = inlined_call_operand.hbm [shape: f32[16,128], index: 0, kind: input, shape index: {}]   ;;  %s559_s1 = inlined_call_operand.hbm [shape: f32[128,384], index: 1, kind: input, shape index: {}]   ;;  %s560_s2 = inlined_call_operand.vmem [shape: f32[1,384], index: 2, kind: input, shape index: {}]   ;;  %s561_s3 = inlined_call_operand.hbm [shape: f32[16,384], index: 3, kind: output, shape index: {}]  }
   0x1   :  { %9 = vsyncpa [#allocation6], 0 }
   0x2   :  { %10 = vsyncpa [#allocation4], 0  ;;  %s483_s12 = smov [#allocation2]   ;;  %s411_s16 = scalar_lea.hbm %s558_s0, 256 }
   0x3   :  { %s16_s13 = sshll.u32 %s483_s12, 4  ;;  %p412_p0 = scmp.ne.s32.totalorder %s558_s0, %s411_s16  ;;  %s17_s13 = int_to_ptr.vmem [resolvable:$true] %s16_s13 }
   0x4   :  { %p415_p1 = scmp.lt.u32.totalorder %s411_s16, %s558_s0 }
   0x6   :  { %p417_p2 = pnand %p415_p1, %p412_p0 }
   0x8   :  { %420 = shalt.err (!%p417_p2)
}
   0x9   :  { %s421_s21 = scalar_lea.vmem %s17_s13, 256  ;;  %p426_p4 = scmp.lt.s32.totalorder %s17_s13, %s17_s13 }
   0xa   :  { %p422_p3 = scmp.ne.s32.totalorder %s17_s13, %s421_s21  ;;  %p427_p5 = scmp.lt.s32.totalorder %s421_s21, %s421_s21 }
   0xc   :  { %p428_p6 = por %p427_p5, %p426_p4 }
   0xe   :  { %p429_p7 = pnand %p428_p6, %p422_p3 }
  0x10   :  { %432 = shalt.err (!%p429_p7)
}
  0x11   :  { %s484_s22 = smov 128   ;;  %s485_s23 = smov 8  }
  0x12   :  { %22 = dma.hbm_to_vmem [thread:$0]  %s558_s0, 256, %s17_s13, [#allocation3], %s484_s22, %s484_s22, %s485_s23  }
  0x13   :  { %s486_s26 = smov [#allocation5]   ;;  %s433_s30 = scalar_lea.hbm %s559_s1, 6144 }
  0x14   :  { %s28_s27 = sshll.u32 %s486_s26, 4  ;;  %p434_p8 = scmp.ne.s32.totalorder %s559_s1, %s433_s30  ;;  %s29_s27 = int_to_ptr.vmem [resolvable:$true] %s28_s27 }
  0x15   :  { %p437_p9 = scmp.lt.u32.totalorder %s433_s30, %s559_s1 }
  0x17   :  { %p439_p10 = pnand %p437_p9, %p434_p8 }
  0x19   :  { %442 = shalt.err (!%p439_p10)
}
  0x1a   :  { %s443_s8 = scalar_lea.vmem %s29_s27, 6144  ;;  %p448_p12 = scmp.lt.s32.totalorder %s29_s27, %s29_s27 }
  0x1b   :  { %p444_p11 = scmp.ne.s32.totalorder %s29_s27, %s443_s8  ;;  %p449_p13 = scmp.lt.s32.totalorder %s443_s8, %s443_s8 }
  0x1d   :  { %p450_p0 = por %p449_p13, %p448_p12 }
  0x1f   :  { %p451_p1 = pnand %p450_p0, %p444_p11 }
  0x21   :  { %454 = shalt.err (!%p451_p1)
}
  0x22   :  { %s487_s0 = smov 384   ;;  %s488_s9 = smov 24  }
  0x23   :  { %34 = dma.hbm_to_vmem [thread:$0]  %s559_s1, 6144, %s29_s27, [#allocation6], %s487_s0, %s487_s0, %s488_s9  }
  0x24   :  { %477 = dma.done.wait [#allocation3], 256  }
  0x25   :  { %478 = vsyncadd [#allocation3], 4294967040 }
  0x26   :  { %479 = dma.done.wait [#allocation6], 6144  }
  0x27   :  { %480 = vsyncadd [#allocation6], 4294961152  ;;  %v489_v0 = vmov 0.0   ;;  %v46_v1 = vld [vmem:[#allocation5 + $0x8] sm:$0xff]  ;;  %v49_v2 = vld [vmem:[#allocation5 + $0x20] sm:$0xff]  ;;  %s490_s13 = smov [#allocation7]  }
  0x28   :  { %174 = vmatprep.mubr.f32.mxu0 %v489_v0  ;;  %v45_v3 = vld [vmem:[#allocation5] sm:$0xff]  ;;  %v339_v4 = vpack.c.bf16 %v49_v2, %v46_v1  ;;  %v48_v5 = vld [vmem:[#allocation5 + $0x18] sm:$0xff]  ;;  %v47_v6 = vld [vmem:[#allocation5 + $0x10] sm:$0xff]  ;;  %s273_s14 = sshll.u32 %s490_s13, 4  ;;  %s274_s14 = int_to_ptr.vmem [resolvable:$true] %s273_s14 }
  0x29   :  { %v50_v7 = vld [vmem:[#allocation5 + $0x28] sm:$0xff]  ;;  %v341_v8 = vpack.c.bf16 %v48_v5, %v45_v3  ;;  %v52_v10 = vld [vmem:[#allocation5 + $0x38] sm:$0xff]  ;;  %v55_v11 = vld [vmem:[#allocation5 + $0x50] sm:$0xff]  ;;  %p460_p3 = scmp.lt.s32.totalorder %s274_s14, %s274_s14 }
  0x2a   :  { %v371_v9 = vpack.c.bf16 %v50_v7, %v47_v6  ;;  %v51_v12 = vld [vmem:[#allocation5 + $0x30] sm:$0xff]  ;;  %340 = vmatprep.subr.bf16.mxu0 %v339_v4  ;;  %v343_v13 = vpack.c.bf16 %v55_v11, %v52_v10  ;;  %v54_v14 = vld [vmem:[#allocation5 + $0x48] sm:$0xff]  ;;  %v53_v15 = vld [vmem:[#allocation5 + $0x40] sm:$0xff] }
  0x2b   :  { %v56_v16 = vld [vmem:[#allocation5 + $0x58] sm:$0xff]  ;;  %342 = vmatpush1.bf16.msra.mxu0 %v341_v8  ;;  %v345_v17 = vpack.c.bf16 %v54_v14, %v51_v12  ;;  %v58_v19 = vld [vmem:[#allocation5 + $0x68] sm:$0xff]  ;;  %v61_v20 = vld [vmem:[#allocation5 + $0x80] sm:$0xff]  ;;  %v95_v12 = vlaneseq }
  0x2c   :  { %372 = vmatprep.subr.bf16.mxu1 %v371_v9  ;;  %v375_v18 = vpack.c.bf16 %v56_v16, %v53_v15  ;;  %v57_v21 = vld [vmem:[#allocation5 + $0x60] sm:$0xff]  ;;  %344 = vmatprep.subr.bf16.mxu0 %v343_v13  ;;  %v347_v22 = vpack.c.bf16 %v61_v20, %v58_v19  ;;  %v60_v23 = vld [vmem:[#allocation5 + $0x78] sm:$0xff]  ;;  %v59_v24 = vld [vmem:[#allocation5 + $0x70] sm:$0xff] }
  0x2d   :  { %374 = vmatpush3.bf16.msra.mxu1 %v371_v9  ;;  %v62_v25 = vld [vmem:[#allocation5 + $0x88] sm:$0xff]  ;;  %v64_v27 = vld [vmem:[#allocation5 + $0x98] sm:$0xff]  ;;  %v67_v28 = vld [vmem:[#allocation5 + $0xb0] sm:$0xff]  ;;  %v349_v31 = vpack.c.bf16 %v60_v23, %v57_v21  ;;  %v96_v13 = vshrl.u32 %v95_v12, 7 }
  0x2e   :  { %376 = vmatprep.subr.bf16.mxu1 %v375_v18  ;;  %v379_v26 = vpack.c.bf16 %v62_v25, %v59_v24  ;;  %v65_v29 = vld [vmem:[#allocation5 + $0xa0] sm:$0xff]  ;;  %v68_v30 = vld [vmem:[#allocation5 + $0xb8] sm:$0xff]  ;;  %v351_v32 = vpack.c.bf16 %v67_v28, %v64_v27  ;;  %v63_v33 = vld [vmem:[#allocation5 + $0x90] sm:$0xff] }
  0x2f   :  { %346 = vmatpush1.bf16.msra.mxu0 %v345_v17  ;;  %v66_v34 = vld [vmem:[#allocation5 + $0xa8] sm:$0xff]  ;;  %v383_v35 = vpack.c.bf16 %v68_v30, %v65_v29  ;;  %v73_v37 = vld [vmem:[#allocation5 + $0xe0] sm:$0xff]  ;;  %v71_v38 = vld [vmem:[#allocation5 + $0xd0] sm:$0xff]  ;;  %v97_v14 = vsub.s32 0, %v96_v13  ;;  %v101_v16 = vsub.s32 1, %v96_v13  ;;  %v105_v17 = vsub.s32 2, %v96_v13 }
  0x30   :  { %348 = vmatprep.subr.bf16.mxu0 %v347_v22  ;;  %v70_v36 = vld [vmem:[#allocation5 + $0xc8] sm:$0xff]  ;;  %v353_v40 = vpack.c.bf16 %v66_v34, %v63_v33  ;;  %v69_v42 = vld [vmem:[#allocation5 + $0xc0] sm:$0xff]  ;;  %v72_v43 = vld [vmem:[#allocation5 + $0xd8] sm:$0xff] }
  0x31   :  { %378 = vmatpush3.bf16.msra.mxu1 %v375_v18  ;;  %v74_v39 = vld [vmem:[#allocation5 + $0xe8] sm:$0xff]  ;;  %v355_v41 = vpack.c.bf16 %v73_v37, %v70_v36  ;;  %v76_v45 = vld [vmem:[#allocation5 + $0xf8] sm:$0xff]  ;;  %v79_v46 = vld [vmem:[#allocation5 + $0x110] sm:$0xff]  ;;  %v357_v49 = vpack.c.bf16 %v72_v43, %v69_v42 }
  0x32   :  { %380 = vmatprep.subr.bf16.mxu1 %v379_v26  ;;  %v387_v44 = vpack.c.bf16 %v74_v39, %v71_v38  ;;  %v77_v47 = vld [vmem:[#allocation5 + $0x100] sm:$0xff]  ;;  %v80_v48 = vld [vmem:[#allocation5 + $0x118] sm:$0xff]  ;;  %v359_v50 = vpack.c.bf16 %v79_v46, %v76_v45  ;;  %v75_v51 = vld [vmem:[#allocation5 + $0xf0] sm:$0xff] }
  0x33   :  { %350 = vmatpush1.bf16.msra.mxu0 %v349_v31  ;;  %v78_v52 = vld [vmem:[#allocation5 + $0x108] sm:$0xff]  ;;  %v43_v53 = vld [vmem:[#allocation2] sm:$0xff]  ;;  %v391_v54 = vpack.c.bf16 %v80_v48, %v77_v47  ;;  %v85_v56 = vld [vmem:[#allocation5 + $0x140] sm:$0xff] }
  0x34   :  { %352 = vmatprep.subr.bf16.mxu0 %v351_v32  ;;  %v82_v55 = vld [vmem:[#allocation5 + $0x128] sm:$0xff]  ;;  %336 = vmatprep.mubr.f32.mxu1 %v43_v53  ;;  %v83_v57 = vld [vmem:[#allocation5 + $0x130] sm:$0xff]  ;;  %v361_v59 = vpack.c.bf16 %v78_v52, %v75_v51  ;;  %v81_v61 = vld [vmem:[#allocation5 + $0x120] sm:$0xff] }
  0x35   :  { %382 = vmatpush3.bf16.msra.mxu1 %v379_v26  ;;  %v86_v58 = vld [vmem:[#allocation5 + $0x148] sm:$0xff]  ;;  %v363_v60 = vpack.c.bf16 %v85_v56, %v82_v55  ;;  %v84_v62 = vld [vmem:[#allocation5 + $0x138] sm:$0xff]  ;;  %v91_v2 = vld [vmem:[#allocation5 + $0x170] sm:$0xff] }
  0x36   :  { %384 = vmatprep.subr.bf16.mxu1 %v383_v35  ;;  %v395_v63 = vpack.c.bf16 %v86_v58, %v83_v57  ;;  %v88_v1 = vld [vmem:[#allocation5 + $0x158] sm:$0xff]  ;;  %v89_v3 = vld [vmem:[#allocation5 + $0x160] sm:$0xff]  ;;  %v365_v5 = vpack.c.bf16 %v84_v62, %v81_v61  ;;  %v87_v7 = vld [vmem:[#allocation5 + $0x150] sm:$0xff] }
  0x37   :  { %354 = vmatpush1.bf16.msra.mxu0 %v353_v40  ;;  %v92_v4 = vld [vmem:[#allocation5 + $0x178] sm:$0xff]  ;;  %v367_v6 = vpack.c.bf16 %v91_v2, %v88_v1  ;;  %v90_v8 = vld [vmem:[#allocation5 + $0x168] sm:$0xff]  ;;  %v93_v15 = vld [vmem:[%s560_s2] sm:$0x7]  ;;  %s455_s2 = scalar_lea.vmem %s274_s14, 768 }
  0x38   :  { %356 = vmatprep.subr.bf16.mxu0 %v355_v41  ;;  %v399_v9 = vpack.c.bf16 %v92_v4, %v89_v3  ;;  %v369_v10 = vpack.c.bf16 %v90_v8, %v87_v7  ;;  %v44_v11 = vld [vmem:[#allocation2 + $0x8] sm:$0xff]  ;;  %v98_v18 = vrot.slane %v93_v15, %v97_v14  ;;  %v102_v19 = vrot.slane %v93_v15, %v101_v16  ;;  %p456_p2 = scmp.ne.s32.totalorder %s274_s14, %s455_s2  ;;  %p461_p4 = scmp.lt.s32.totalorder %s455_s2, %s455_s2 }
  0x39   :  { %386 = vmatpush3.bf16.msra.mxu1 %v383_v35  ;;  %v106_v20 = vrot.slane %v93_v15, %v105_v17 }
  0x3a   :  { %388 = vmatprep.subr.bf16.mxu1 %v387_v44  ;;  %p462_p5 = por %p461_p4, %p460_p3 }
  0x3b   :  { %358 = vmatpush1.bf16.msra.mxu0 %v357_v49 }
  0x3c   :  { %360 = vmatprep.subr.bf16.mxu0 %v359_v50  ;;  %p463_p6 = pnand %p462_p5, %p456_p2 }
  0x3d   :  { %390 = vmatpush3.bf16.msra.mxu1 %v387_v44 }
  0x3e   :  { %392 = vmatprep.subr.bf16.mxu1 %v391_v54 }
  0x3f   :  { %362 = vmatpush1.bf16.msra.mxu0 %v361_v59 }
  0x40   :  { %364 = vmatprep.subr.bf16.mxu0 %v363_v60 }
  0x41   :  { %394 = vmatpush3.bf16.msra.mxu1 %v391_v54 }
  0x42   :  { %396 = vmatprep.subr.bf16.mxu1 %v395_v63 }
  0x43   :  { %366 = vmatpush1.bf16.msra.mxu0 %v365_v5 }
  0x44   :  { %368 = vmatprep.subr.bf16.mxu0 %v367_v6 }
  0x45   :  { %398 = vmatpush3.bf16.msra.mxu1 %v395_v63 }
  0x46   :  { %400 = vmatprep.subr.bf16.mxu1 %v399_v9 }
  0x47   :  { %370 = vmatpush1.bf16.msra.mxu0 %v369_v10 }
  0x49   :  { %402 = vmatpush3.bf16.msra.mxu1 %v399_v9 }
  0x4a   :  { %175 = vmatmul.mubr.f32.vlgmr.msra.gmra.mrb[0].mxu0 %v43_v53 }
  0x4b   :  { %180 = vmatprep.mubr.f32.mxu0 %v489_v0 }
  0x4c   :  { %337 = vmatmul.mubr.f32.vlgmr.msra.gmra.mrb[0].mxu1 %v44_v11 }
  0x4e   :  { %181 = vmatmul.mubr.f32.gmra.mrb[2].mxu0 %v44_v11 }
 0x11d   :  { %v176_v21 = vpop.f32.mrb[0].mxu0 }
 0x11e   :  { %v177_v22 = vadd.f32 %v176_v21, %v98_v18  ;;  %v178_v23 = vpop.f32.mrb[1].mxu0 }
 0x11f   :  { %v338_v24 = vpop.f32.mrb[0].mxu1  ;;  %v179_v25 = vadd.f32 %v178_v23, %v102_v19 }
 0x120   :  { %v259_v0 = vadd.f32 %v338_v24, %v106_v20  ;;  %v253_v26 = vpop.f32.mrb[1].mxu1  ;;  %262 = vst [vmem:[#allocation7] sm:$0xff] %v177_v22 }
 0x121   :  { %v254_v27 = vadd.f32 %v253_v26, %v106_v20  ;;  %263 = vst [vmem:[#allocation7 + $0x8] sm:$0xff] %v179_v25  ;;  %v182_v28 = vpop.f32.mrb[2].mxu0 }
 0x122   :  { %267 = vst [vmem:[#allocation7 + $0x28] sm:$0xff] %v259_v0  ;;  %v183_v29 = vadd.f32 %v182_v28, %v98_v18  ;;  %v184_v30 = vpop.f32.mrb[3].mxu0 }
 0x123   :  { %264 = vst [vmem:[#allocation7 + $0x10] sm:$0xff] %v254_v27  ;;  %v185_v31 = vadd.f32 %v184_v30, %v102_v19 }
 0x124   :  { %265 = vst [vmem:[#allocation7 + $0x18] sm:$0xff] %v183_v29 }
 0x125   :  { %266 = vst [vmem:[#allocation7 + $0x20] sm:$0xff] %v185_v31 }
 0x126   :  { %466 = shalt.err (!%p463_p6)
}
 0x127   :  { %s467_s17 = scalar_lea.hbm %s561_s3, 768 }
 0x128   :  { %p468_p7 = scmp.ne.s32.totalorder %s561_s3, %s467_s17  ;;  %p471_p8 = scmp.lt.u32.totalorder %s467_s17, %s561_s3 }
 0x12a   :  { %p473_p9 = pnand %p471_p8, %p468_p7 }
 0x12c   :  { %476 = shalt.err (!%p473_p9)
}
 0x12d   :  { %279 = dma.vmem_to_hbm [thread:$0]  %s274_s14, 768, %s561_s3, [#allocation4], %s487_s0, %s487_s0, %s488_s9  }
 0x12e   :  { %481 = dma.done.wait [#allocation4], 768  }
 0x12f   :  { %482 = vsyncadd [#allocation4], 4294966528 }
 0x130   :  { %283 = vsyncpa [#allocation3], 1 }
 0x131   :  { %284 = vsyncpa [#allocation6], 1 }
 0x132   :  { %285 = vsyncpa [#allocation4], 1 }

</bundles_post_ra>
